<compile_context>
chip_gen: v6e
topology: v6e:2x2x1
jax: 0.10.0
libtpu: 0.0.40
codegen_flags: <defaults>
</compile_context>

<pallas_src>
import numpy as np

import jax
import jax.numpy as jnp
from jax.experimental import pallas as pl
from jax.experimental.pallas import tpu as pltpu


def _drop_path_kernel(x_ref, scale_ref, o_ref):
    # (TB, TF) * (TB, 1) broadcast over the lane axis; scale is f32, cast on store.
    o_ref[...] = (x_ref[...] * scale_ref[...]).astype(o_ref.dtype)


def _drop_path_residual_kernel(x_ref, scale_ref, sc_ref, o_ref):
    # Fused `shortcut + drop_path(branch)` — how the op is used in EfficientNetV2.
    o_ref[...] = (sc_ref[...] + x_ref[...] * scale_ref[...]).astype(o_ref.dtype)


def _round_up(n, m):
    return ((n + m - 1) // m) * m


def _pick_batch_tile(b, dtype):
    # Sub-32-bit dtypes pack along sublanes: keep TB a multiple of the packed
    # sublane count (8 for f32, 16 for bf16, 32 for int8/fp8) when B allows it;
    # otherwise fall back to the full batch (block == full array dim is legal).
    itemsize = jnp.dtype(dtype).itemsize
    sub = 8 * max(1, 4 // max(1, itemsize))
    if b % sub != 0:
        return b
    for cand in (128, 64, 32, 16, 8):
        if cand % sub == 0 and b % cand == 0:
            return cand
    return b


def drop_path_pallas(x, drop_prob: float, key, training: bool = True, shortcut=None):
    """Pallas DropPath.

    x: (B, C, H, W) (any trailing dims).  `key` is a jax.random PRNG key; fold
    in the step counter per training step for fresh randomness (matches the
    torch.rand semantics of the reference).  If `shortcut` (same shape as x)
    is given, returns `shortcut + drop_path(x)` fused in a single kernel.
    """
    if drop_prob == 0.0 or not training:
        return x if shortcut is None else x + shortcut

    keep_prob = 1.0 - float(drop_prob)

    B = x.shape[0]
    F = int(np.prod(x.shape[1:]))
    x2 = x.reshape(B, F)

    # Per-sample Bernoulli(keep_prob) scale, computed once (hoisted out of the
    # tile loop).  floor(keep_prob + U[0,1)) is 1 w.p. keep_prob else 0.
    # Kept in f32 — the multiply runs in f32 and the store casts to x.dtype.
    u = jax.random.uniform(key, (B, 1), dtype=jnp.float32)
    scale = jnp.floor(keep_prob + u) * (1.0 / keep_prob)

    # --- tiling -------------------------------------------------------------
    TB = _pick_batch_tile(B, x.dtype)
    itemsize = jnp.dtype(x.dtype).itemsize

    # ~4 MiB per block array: large enough that the ~0.35 us per-grid-step
    # overhead is a few percent, small enough that the full double-buffered
    # footprint (in + out + optional shortcut) stays far below v7x's 64 MiB/TC.
    per_block_budget = 4 * 1024 * 1024
    tf_cap = max(128, (per_block_budget // (TB * itemsize)) // 128 * 128)
    TF = min(_round_up(F, 128), tf_cap)

    # Guarantee >= 2 (ideally 4) blocks along the feature axis when the batch
    # axis is a single block, so both v7x TensorCores are used.
    if B // TB == 1 and pl.cdiv(F, TF) == 1 and F > 128:
        want = 4 if F >= 512 else 2
        TF = max(128, _round_up(-(-F // want), 128))

    grid = (B // TB, pl.cdiv(F, TF))  # feature axis may be non-divisible: masked

    in_specs = [
        pl.BlockSpec((TB, TF), lambda i, j: (i, j)),
        pl.BlockSpec((TB, 1), lambda i, j: (i, 0)),  # resident across inner loop
    ]
    args = (x2, scale)
    kernel = _drop_path_kernel
    n_big = 2  # x + out
    if shortcut is not None:
        sc2 = shortcut.reshape(B, F)
        in_specs.append(pl.BlockSpec((TB, TF), lambda i, j: (i, j)))
        args = (x2, scale, sc2)
        kernel = _drop_path_residual_kernel
        n_big = 3

    block_bytes = TB * TF * itemsize
    footprint = 2 * n_big * block_bytes + 2 * TB * 4  # double-buffered blocks + scale
    vmem_limit = int(min(48 * 2**20, max(32 * 2**20, 2 * footprint)))

    out2 = pl.pallas_call(
        kernel,
        out_shape=jax.ShapeDtypeStruct((B, F), x.dtype),
        grid=grid,
        in_specs=in_specs,
        out_specs=pl.BlockSpec((TB, TF), lambda i, j: (i, j)),
        compiler_params=pltpu.CompilerParams(
            # Pure elementwise: every grid point independent -> both axes
            # shardable across TensorCores.
            dimension_semantics=("parallel", "parallel"),
            vmem_limit_bytes=vmem_limit,
        ),
    )(*args)

    return out2.reshape(x.shape)


if __name__ == "__main__":
    key = jax.random.PRNGKey(0)
    xkey, skey, dkey = jax.random.split(key, 3)

    drop_prob = 0.5
    keep_prob = 1.0 - drop_prob

    # --- basic case (shapes consistent with EfficientNetV2 residual branch) ---
    x = jax.random.normal(xkey, (2, 4, 16, 16), dtype=jnp.float32)
    out = jax.block_until_ready(drop_path_pallas(x, drop_prob, dkey, training=True))
    ref_scaled = np.asarray(x) / keep_prob
    for b in range(x.shape[0]):
        ob = np.asarray(out[b])
        assert np.allclose(ob, 0.0) or np.allclose(ob, ref_scaled[b], rtol=1e-6, atol=1e-6), \
            "per-sample drop-path semantics violated"

    # --- identity paths -------------------------------------------------------
    out_eval = jax.block_until_ready(drop_path_pallas(x, drop_prob, dkey, training=False))
    assert np.allclose(np.asarray(out_eval), np.asarray(x))
    out_p0 = jax.block_until_ready(drop_path_pallas(x, 0.0, dkey, training=True))
    assert np.allclose(np.asarray(out_p0), np.asarray(x))

    # --- non-128-multiple feature sizes exercise the masked boundary block ---
    for shape in [(3, 3, 5, 7), (2, 3, 20, 20)]:
        x_odd = jax.random.normal(xkey, shape, dtype=jnp.float32)
        out_odd = jax.block_until_ready(drop_path_pallas(x_odd, drop_prob, dkey, training=True))
        ref_odd = np.asarray(x_odd) / keep_prob
        for b in range(shape[0]):
            ob = np.asarray(out_odd[b])
            assert np.allclose(ob, 0.0) or np.allclose(ob, ref_odd[b], rtol=1e-6, atol=1e-6)

    # --- fused residual add, bf16 (common EfficientNetV2 config) -------------
    x_bf = jax.random.normal(xkey, (4, 8, 8, 16), dtype=jnp.bfloat16)
    sc_bf = jax.random.normal(skey, (4, 8, 8, 16), dtype=jnp.bfloat16)
    out_bf = jax.block_until_ready(
        drop_path_pallas(x_bf, drop_prob, dkey, training=True, shortcut=sc_bf)
    )
    x_np = np.asarray(x_bf, dtype=np.float32)
    sc_np = np.asarray(sc_bf, dtype=np.float32)
    o_np = np.asarray(out_bf, dtype=np.float32)
    for b in range(x_bf.shape[0]):
        keep_ref = sc_np[b] + x_np[b] / keep_prob
        drop_ref = sc_np[b]
        ok_keep = np.allclose(o_np[b], keep_ref, rtol=2e-2, atol=2e-2)
        ok_drop = np.allclose(o_np[b], drop_ref, rtol=2e-2, atol=2e-2)
        assert ok_keep or ok_drop, "fused residual drop-path semantics violated"

    print("KERNEL_OK")
</pallas_src>

<mosaic_0001>
module attributes {stable_mosaic.version = 11 : i64} {
  func.func @_drop_path_kernel(%arg0: i32, %arg1: i32, %arg2: memref<2x256xf32, #tpu.memory_space<vmem>>, %arg3: memref<2x1xf32, #tpu.memory_space<vmem>>, %arg4: memref<2x256xf32, #tpu.memory_space<vmem>>) attributes {dimension_semantics = [#tpu.dimension_semantics<parallel>, #tpu.dimension_semantics<parallel>], iteration_bounds = array<i64: 1, 4>, scalar_prefetch = 0 : i64, scratch_operands = 0 : i64, tpu.core_type = #tpu.core_type<tc>, window_params = [{transform_indices = @transform_0, window_bounds = array<i64: 2, 256>}, {transform_indices = @transform_1, window_bounds = array<i64: 2, 1>}, {transform_indices = @transform_2, window_bounds = array<i64: 2, 256>}]} {
    %c0 = arith.constant 0 : index
    %c0_0 = arith.constant 0 : index
    %0 = vector.load %arg2[%c0, %c0_0] : memref<2x256xf32, #tpu.memory_space<vmem>>, vector<2x256xf32>
    %c0_1 = arith.constant 0 : index
    %c0_2 = arith.constant 0 : index
    %1 = vector.load %arg3[%c0_1, %c0_2] : memref<2x1xf32, #tpu.memory_space<vmem>>, vector<2x1xf32>
    %2 = vector.broadcast %1 : vector<2x1xf32> to vector<2x256xf32>
    %3 = arith.mulf %0, %2 : vector<2x256xf32>
    %c0_3 = arith.constant 0 : index
    %c0_4 = arith.constant 0 : index
    %4 = vector.load %arg4[%c0_3, %c0_4] : memref<2x256xf32, #tpu.memory_space<vmem>>, vector<2x256xf32>
    tpu.vector_store %arg4[%c0_3, %c0_4], %3 {strides = array<i32>} : memref<2x256xf32, #tpu.memory_space<vmem>>, vector<2x256xf32>,
    return
  }
  func.func @transform_0(%arg0: i32, %arg1: i32) -> (i32, i32) {
    %c0_i32 = arith.constant 0 : i32
    return %arg0, %arg1 : i32, i32
  }
  func.func @transform_1(%arg0: i32, %arg1: i32) -> (i32, i32) {
    %c0_i32 = arith.constant 0 : i32
    %c0_i32_0 = arith.constant 0 : i32
    return %arg0, %c0_i32 : i32, i32
  }
  func.func @transform_2(%arg0: i32, %arg1: i32) -> (i32, i32) {
    %c0_i32 = arith.constant 0 : i32
    return %arg0, %arg1 : i32, i32
  }
}

</mosaic_0001>

<bundles_post_ra>
// kernel: tpu_custom_call.1
= control target key start
LH: loop header
LB: loop body
LE: loop exit
PB: predicated region body
PF: predicated region fallthrough
CT: control target
= control target key end

     0   :  { %7 = vsyncpa [#allocation3], 0  ;;  %s676_s0 = inlined_call_operand.hbm [shape: f32[2,1024], index: 0, kind: input, shape index: {}]   ;;  %s677_s1 = inlined_call_operand.vmem [shape: f32[2,1], index: 1, kind: input, shape index: {}]   ;;  %s678_s2 = inlined_call_operand.hbm [shape: f32[2,1024], index: 2, kind: output, shape index: {}]  }
   0x1   :  { %9 = vsyncpa [#allocation3 + $0x1], 0 }
   0x2   :  { %10 = vsyncpa [#allocation4], 0 }
   0x3   :  { %12 = vsyncpa [#allocation4 + $0x1], 0  ;;  %s541_s9 = smov 0   ;;  %s543_s10 = smov 0  }
   0x4   :  { %s545_s11 = smov 0   ;;  %s547_s12 = smov 0  }
   0x5   :  { %s549_s13 = smov 0   ;;  %s551_s14 = smov 0  }
   0x6 LB: > { %s329_s15 = sadd.s32 4294967295, %s520_s14   ;;  %s330_s16 = sadd.s32 4294967294, %s520_s14   ;;  %s520_s14 = sphi %s551_s14, %s18_s14   ;;  %s516_s13 = sphi %s549_s13, %s689_s13   ;;  %s512_s12 = sphi %s547_s12, %s688_s12   ;;  %s508_s11 = sphi %s545_s11, %s687_s11   ;;  %s504_s10 = sphi %s543_s10, %s686_s10   ;;  %s500_s9 = sphi %s541_s9, %s685_s9  }
   0x7   : > { %s27_s17 = sadd.s32 1, %s516_s13  ;;  %s39_s18 = sadd.s32 1, %s508_s11 }
   0x8   : > { %p28_p0 = scmp.ge.s32.totalorder %s27_s17, 4  ;;  %p46_p1 = scmp.ne.s32.totalorder %s508_s11, %s504_s10 }
   0x9   : > { %p47_p2 = scmp.eq.s32.totalorder %s520_s14, 0  ;;  %p52_p3 = scmp.ne.s32.totalorder %s504_s10, %s500_s9 }
   0xa   : > { %s691_s17 = smov (%p28_p0, %s27_s17), 0  ;;  %p53_p5 = scmp.eq.s32.totalorder %s329_s15, 0 }
   0xb   : > { %p582_p4 = por %p47_p2, %p46_p1  ;;  %s35_s20 = ssub.s32 %s516_s13, %s691_s17 }
   0xc   : > { %p104_p6 = scmp.eq.s32.totalorder %s329_s15, 3  ;;  %p37_p7 = scmp.eq.s32.totalorder %s35_s20, 0 }
   0xd   : > { %p588_p8 = por %p53_p5, %p52_p3  ;;  %p110_p10 = scmp.eq.s32.totalorder %s330_s16, 3 }
   0xe   : > { %p592_p9 = por %p104_p6, %p46_p1  ;;  %p359_p12 = scmp.lt.s32.totalorder %s520_s14, 4 }
   0xf   : > { %s597_s23 = scalar_select %p37_p7, %s508_s11, %s39_s18  }
  0x10   : > { %p599_p11 = por %p110_p10, %p52_p3  ;;  %s137_s25 = sand.u32 1, %s508_s11  }
  0x11   : > { %s334_s26 = sshll.u32 %s137_s25, 2  ;;  %s345_s27 = sshll.u32 %s516_s13, 6 }
  0x12   : > { %s682_s24 = scalar_select %p599_p11, 1, 0 }
  0x13   : > { %s149_s30 = scalar_lea.hbm %s676_s0, %s345_s27  ;;  %s141_s3 = scalar_lea.vmem [#allocation2], %s334_s26 }
  0x14   : > { %s151_s4 = sshll.u32 %s141_s3, 4  ;;  %p611_p13 = pnand %p359_p12, %p582_p4  ;;  %s152_s4 = int_to_ptr.vmem [resolvable:$true] %s151_s4 }
  0x15   : > { %p337_p0 = scmp.ge.s32.totalorder %s520_s14, 1  ;;  %p156_p1 = scmp.lt.s32.totalorder %s520_s14, 5 }
  0x16   : > { %s138_s6 = scalar_lea.sflag [#allocation3], %s137_s25  ;;  %p414_p2 = pneg %p611_p13 }
  0x17   : > { %s425_s7 = scalar_lea.vmem %s152_s4, 64  ;;  %s522_s8 = smov [#allocation2]  }
  0x18   : > { %p426_p3 = scmp.ne.s32.totalorder %s152_s4, %s425_s7  ;;  %s430_s15 = sshll.u32 %s522_s8, 4  ;;  %s431_s15 = int_to_ptr.vmem [resolvable:$false] %s430_s15 }
  0x19   : > { %s432_s16 = scalar_lea.vmem %s431_s15, 128  ;;  %p433_p7 = scmp.lt.s32.totalorder %s152_s4, %s431_s15 }
  0x1a   : > { %p428_p5 = pnand %p426_p3, %p414_p2  ;;  %p434_p10 = scmp.lt.s32.totalorder %s432_s16, %s425_s7 }
  0x1c   : > { %p429_p6 = pneg %p428_p5  ;;  %p435_p4 = por %p434_p10, %p433_p7 }
  0x1e   : > { %p436_p12 = pnand %p435_p4, %p429_p6 }
  0x20   : > { %439 = shalt.err (!%p436_p12)
}
  0x21   : > { %354 = dma.hbm_to_vmem [thread:$0]  (!%p611_p13), %s149_s30, 64, %s152_s4, %s138_s6  }
  0x22   : > { %p157_p11 = pnand %p337_p0, %p156_p1 }
  0x23   : > { %s626_s18 = sand.u32 (!%p157_p11), 1, %s504_s10  }
  0x24   : > { %160 = sbr.rel (%p157_p11) target bundleno = 185 (0xb9), region = 28  ;;  %s338_s19 = sshll.u32 (!%p157_p11), %s626_s18, 2 }
  0x25   : > { %s163_s20 = scalar_lea.sflag (!%p157_p11), [#allocation3], %s626_s18  ;;  %s166_s25 = scalar_lea.vmem (!%p157_p11), [#allocation2], %s338_s19 }
  0x29   : > { %491 = dma.done.wait (%p588_p8), %s163_s20, 64  }
  0x2a   : > { %493 = vsyncadd (%p588_p8), %s163_s20, 4294967232  ;;  %v523_v0 = vmov 0   ;;  %v198_v1 = vld [vmem:[%s677_s1] sm:$0x3]  ;;  %v524_v2 = vmov 269488144   ;;  %v206_v4 = vlaneseq }
  0x2b   : > { %411 = vset.pattern.permute.xlu0 %v523_v0  ;;  %v204_v3 = vunpack.c.l.s4 %v524_v2  ;;  %v197_v9 = vld [vmem:[%s166_s25] sm:$0xf]  ;;  %s346_s21 = sshll.u32 %s512_s12, 6  ;;  %s190_s28 = scalar_lea.vmem [#allocation5], %s338_s19 }
  0x2c   : > { %201 = vperm.xlu0 %411, %v198_v1   ;;  %v207_v6 = vshrl.u32 %v206_v4, 7  ;;  %s230_s29 = sshll.u32 %s190_s28, 4  ;;  %s228_s4 = scalar_lea.hbm %s678_s2, %s346_s21  ;;  %s231_s29 = int_to_ptr.vmem [resolvable:$true] %s230_s29 }
  0x2d   : > { %v205_v5 = vunpack.c.0.s8 %v204_v3  ;;  %s214_s5 = scalar_lea.sflag [#allocation4], %s626_s18  ;;  %s440_s6 = scalar_lea.vmem %s231_s29, 64 }
  0x2e   : > { %p441_p8 = scmp.ne.s32.totalorder %s231_s29, %s440_s6  ;;  %s525_s7 = smov [#allocation5]  }
  0x2f   : > { %v208_v7 = vsub.s32 %v205_v5, %v207_v6  ;;  %s444_s8 = sshll.u32 %s525_s7, 4  ;;  %s445_s8 = int_to_ptr.vmem [resolvable:$false] %s444_s8 }
  0x30   : > { %p442_p11 = pnand %p441_p8, %p592_p9  ;;  %s446_s12 = scalar_lea.vmem %s445_s8, 128 }
  0x31   : > { %p447_p0 = scmp.lt.s32.totalorder %s231_s29, %s445_s8  ;;  %p448_p1 = scmp.lt.s32.totalorder %s446_s12, %s440_s6 }
  0x32   : > { %p443_p13 = pneg %p442_p11 }
  0x33   : > { %p449_p2 = por %p448_p1, %p447_p0 }
  0x35   : > { %p450_p3 = pnand %p449_p2, %p443_p13 }
  0xa7   : > { %v202_v8 = vpop.permute.xlu0 %201 }
  0xa8   : > { %v209_v10 = vrot.slane %v202_v8, %v208_v7 }
  0xaa   : > { %v211_v11 = vmul.f32 %v209_v10, %v197_v9 }
  0xac   : > { %212 = vst [vmem:[%s190_s28] sm:$0xf] %v211_v11 }
  0xad   : > { %453 = shalt.err (!%p450_p3)
}
  0xae   : > { %s454_s15 = scalar_lea.hbm %s228_s4, 64  ;;  %s458_s19 = scalar_lea.hbm %s678_s2, 256 }
  0xaf   : > { %p455_p5 = scmp.ne.s32.totalorder %s228_s4, %s454_s15  ;;  %p459_p10 = scmp.lt.s32.totalorder %s228_s4, %s678_s2 }
  0xb0   : > { %p460_p4 = scmp.lt.s32.totalorder %s458_s19, %s454_s15 }
  0xb1   : > { %p456_p6 = pnand %p455_p5, %p592_p9 }
  0xb2   : > { %p461_p12 = por %p460_p4, %p459_p10 }
  0xb3   : > { %p457_p7 = pneg %p456_p6 }
  0xb5   : > { %p462_p8 = pnand %p461_p12, %p457_p7 }
  0xb7   : > { %465 = shalt.err (!%p462_p8)
}
  0xb8   : > { %349 = dma.vmem_to_hbm [thread:$0]  (%p592_p9), %s231_s29, 64, %s228_s4, %s214_s5  }
  0xb9 PF: > { %p360_p11 = scmp.ge.s32.totalorder %s520_s14, 2  ;;  %s242_s26 = sand.u32 1, %s500_s9  }
  0xba   : > { %p684_p13 = scmp.ne.s32.totalorder %s682_s24, 0  ;;  %s243_s27 = scalar_lea.sflag [#allocation4], %s242_s26 }
  0xbc   : > { %p356_p0 = pnand %p360_p11, %p684_p13 }
  0xbe   : > { %p357_p1 = pneg %p356_p0 }
  0xc0   : > { %495 = dma.done.wait (%p357_p1), %s243_s27, 64  }
  0xc1   : > { %497 = vsyncadd (%p357_p1), %s243_s27, 4294967232  ;;  %s18_s14 = sadd.s32 1, %s520_s14   ;;  %s685_s9 = smov %s504_s10 }
  0xc2   : > { %p15_p2 = scmp.ge.s32.totalorder %s18_s14, 6   ;;  %s686_s10 = smov %s508_s11 }
  0xc3   : > { %s687_s11 = smov %s597_s23  ;;  %s688_s12 = smov %s516_s13 }
  0xc4   : > { %s689_s13 = smov %s691_s17  ;;  %17 = sbr.rel (!%p15_p2) target bundleno = 6 (0x6), region = 76 }
  0xc9   :  { %248 = vsyncpa [#allocation3], 1 }
  0xca   :  { %250 = vsyncpa [#allocation3 + $0x1], 1 }
  0xcb   :  { %251 = vsyncpa [#allocation4], 1 }
  0xcc   :  { %253 = vsyncpa [#allocation4 + $0x1], 1 }

</bundles_post_ra>
